<compile_context>
chip_gen: v7x
topology: tpu7x:2x2x1
jax: 0.10.0
libtpu: 0.0.40
codegen_flags: <defaults>
</compile_context>

<pallas_src>
import functools

import jax
import jax.numpy as jnp
from jax.experimental import pallas as pl
from jax.experimental.pallas import tpu as pltpu


# ----------------------------- tiling model ------------------------------------------------

_F32_TEMPS_PER_ELEM = 24            # ~6 live full-tile f32 temporaries per element
_ROW_STAT_BYTES = 8 * 512           # ~8 lane-replicated (TB,1) f32 row stats -> 512 B/row each
_LIVE_VMEM_BUDGET = 16 * 1024 * 1024   # v7x-safe live budget (32 MiB scoped of 64 MiB physical)
_VMEM_LIMIT_BYTES = 32 * 1024 * 1024


def _round_down8(x):
    return max(8, (x // 8) * 8)


def _choose_tiles(B, C, in_bytes, block_batch=None, block_classes=None):
    """Pick (batch_tile, class_tile) from a live-VMEM byte model (works on v5e/v6e/v7x)."""
    # Per (TB, TC)-element: 2 input streams x 2 pipeline buffers (caller dtype) + f32 temps.
    per_elem = 4 * in_bytes + _F32_TEMPS_PER_ELEM

    # --- class tile -------------------------------------------------------------------------
    if block_classes is not None and block_classes < C:
        assert C % block_classes == 0 and block_classes % 128 == 0, \
            "block_classes must be a multiple of 128 that divides C"
        tc = int(block_classes)
    else:
        tc = C
        # Tile the class axis only when even 8 rows of the full class row would blow the
        # budget (vocab-scale C; matters most on v7x's 64 MiB VMEM).
        if 8 * (C * per_elem + _ROW_STAT_BYTES) > _LIVE_VMEM_BUDGET:
            for cand in (8192, 4096, 2048, 1024, 512, 256, 128):
                if C % cand == 0:
                    tc = cand
                    break
            # TODO(synk): vocab-scale C with no multiple-of-128 divisor falls back to a single
            # full-C block and may exceed the scoped VMEM limit on v7x.

    # --- batch tile -------------------------------------------------------------------------
    cap_rows = _round_down8(_LIVE_VMEM_BUDGET // (tc * per_elem + _ROW_STAT_BYTES))
    if block_batch is not None:
        tb = min(int(block_batch), B)
        if tb < B:
            tb = _round_down8(tb)
        return tb, tc
    if B < 16:
        tb = B if B <= cap_rows else cap_rows
    else:
        # >=2 batch tiles whenever B permits, so the "parallel" axis splits across both
        # TensorCores on v7x instead of collapsing to a single tile.
        two_way = ((B + 1) // 2 + 7) // 8 * 8
        tb = min(cap_rows, two_way)
    return tb, tc


# ----------------------------- kernels ------------------------------------------------------

def _kl_single_kernel(s_ref, t_ref, o_ref, *, inv_temp, tile_b, batch_b, ragged_b):
    """Full class row in one tile (common case): direct, scratch-free."""
    i = pl.program_id(0)

    # Stream in caller dtype (bf16 ok), promote to f32 in-kernel.
    s = s_ref[...].astype(jnp.float32) * inv_temp
    t = t_ref[...].astype(jnp.float32)

    if ragged_b:
        row_valid = (i * tile_b
                     + jax.lax.broadcasted_iota(jnp.int32, (tile_b, 1), 0)) < batch_b
        s = jnp.where(row_valid, s, 0.0)      # clamp OOB-padded rows before exp/log
        t = jnp.where(row_valid, t, 0.0)

    # Student log-softmax pieces (row-wise along the class/lane axis).
    s_shift = s - jnp.max(s, axis=1, keepdims=True)
    s_sum = jnp.sum(jnp.exp(s_shift), axis=1, keepdims=True)          # (TB, 1)

    # Teacher softmax pieces.
    t_shift = t - jnp.max(t, axis=1, keepdims=True)
    t_exp = jnp.exp(t_shift)
    t_sum = jnp.sum(t_exp, axis=1, keepdims=True)                     # (TB, 1)

    # Fused KL per row (uses sum_c p_t == 1):
    #   kl = sum_c p_t*(t_shift - s_shift) - log(t_sum) + log(s_sum)
    num = jnp.sum(t_exp * (t_shift - s_shift), axis=1, keepdims=True)
    inv_t = pl.reciprocal(t_sum)
    kl_row = num * inv_t + jnp.log(s_sum * inv_t)                     # one log, one recip

    if ragged_b:
        kl_row = jnp.where(row_valid, kl_row, 0.0)

    # Lane/sublane-dense partial write: slab holds tile_sum/1024 replicated so the wrapper
    # can do a plain dense sum (no strided gather).
    tile_sum = jnp.sum(kl_row) * (1.0 / (8.0 * 128.0))
    o_ref[...] = jnp.broadcast_to(tile_sum, o_ref.shape).astype(jnp.float32)


def _kl_ctiled_kernel(s_ref, t_ref, o_ref, ms_ref, ds_ref, mt_ref, dt_ref, w_ref,
                      *, inv_temp, tile_b, batch_b, ragged_b):
    """Class-tiled path: online log-sum-exp merge across class tiles (vocab-scale C)."""
    i = pl.program_id(0)
    j = pl.program_id(1)
    nc = pl.num_programs(1)

    s = s_ref[...].astype(jnp.float32) * inv_temp
    t = t_ref[...].astype(jnp.float32)

    if ragged_b:
        row_valid = (i * tile_b
                     + jax.lax.broadcasted_iota(jnp.int32, (tile_b, 1), 0)) < batch_b
        s = jnp.where(row_valid, s, 0.0)
        t = jnp.where(row_valid, t, 0.0)

    # Per-chunk statistics.
    c_ms = jnp.max(s, axis=1, keepdims=True)
    c_mt = jnp.max(t, axis=1, keepdims=True)
    e_s = jnp.exp(s - c_ms)
    e_t = jnp.exp(t - c_mt)
    c_ds = jnp.sum(e_s, axis=1, keepdims=True)
    c_dt = jnp.sum(e_t, axis=1, keepdims=True)
    c_w = jnp.sum(e_t * (t - s), axis=1, keepdims=True)   # sum exp(t - c_mt) * (t - s)

    @pl.when(j == 0)
    def _():
        ms_ref[...] = c_ms
        mt_ref[...] = c_mt
        ds_ref[...] = c_ds
        dt_ref[...] = c_dt
        w_ref[...] = c_w

    @pl.when(j > 0)
    def _():
        ms_new = jnp.maximum(ms_ref[...], c_ms)
        mt_new = jnp.maximum(mt_ref[...], c_mt)
        a_s = jnp.exp(ms_ref[...] - ms_new)
        b_s = jnp.exp(c_ms - ms_new)
        a_t = jnp.exp(mt_ref[...] - mt_new)
        b_t = jnp.exp(c_mt - mt_new)
        ds_ref[...] = a_s * ds_ref[...] + b_s * c_ds
        dt_ref[...] = a_t * dt_ref[...] + b_t * c_dt
        w_ref[...] = a_t * w_ref[...] + b_t * c_w
        ms_ref[...] = ms_new
        mt_ref[...] = mt_new

    @pl.when(j == nc - 1)
    def _():
        # kl_row = w/d_t + (m_s - m_t) + log(d_s/d_t)
        inv_t = pl.reciprocal(dt_ref[...])
        kl_row = (w_ref[...] * inv_t + (ms_ref[...] - mt_ref[...])
                  + jnp.log(ds_ref[...] * inv_t))
        if ragged_b:
            kl_row = jnp.where(row_valid, kl_row, 0.0)
        tile_sum = jnp.sum(kl_row) * (1.0 / (8.0 * 128.0))
        o_ref[...] = jnp.broadcast_to(tile_sum, o_ref.shape).astype(jnp.float32)


# ----------------------------- wrapper -------------------------------------------------------

def distillation_loss(outputs_student, outputs_teacher, temperature=3.0,
                      block_batch=None, block_classes=None):
    """Pallas TPU distillation loss (scalar, float32).

    Pass logits in their compute dtype (bf16 preferred for HBM-bound shapes); they are
    promoted to f32 inside the kernel. Do NOT pre-cast to f32 in the caller.
    """
    assert outputs_student.shape == outputs_teacher.shape
    assert outputs_student.ndim == 2
    B, C = outputs_student.shape

    in_bytes = max(jnp.dtype(outputs_student.dtype).itemsize,
                   jnp.dtype(outputs_teacher.dtype).itemsize)
    TB, TC = _choose_tiles(B, C, in_bytes, block_batch, block_classes)
    if TB < B:
        assert TB % 8 == 0, "batch tile must be a multiple of 8 when tiling the batch axis"
    if TC < C:
        assert C % TC == 0 and TC % 128 == 0
    num_b = pl.cdiv(B, TB)
    num_c = C // TC
    ragged_b = (B % TB) != 0

    common = dict(inv_temp=1.0 / float(temperature), tile_b=TB, batch_b=B, ragged_b=ragged_b)

    if num_c == 1:
        kernel = functools.partial(_kl_single_kernel, **common)
        grid = (num_b,)
        in_specs = [pl.BlockSpec((TB, C), lambda i: (i, 0)),
                    pl.BlockSpec((TB, C), lambda i: (i, 0))]
        out_specs = pl.BlockSpec((1, 8, 128), lambda i: (i, 0, 0))
        scratch = ()
        dims = ("parallel",)
    else:
        kernel = functools.partial(_kl_ctiled_kernel, **common)
        grid = (num_b, num_c)
        in_specs = [pl.BlockSpec((TB, TC), lambda i, j: (i, j)),
                    pl.BlockSpec((TB, TC), lambda i, j: (i, j))]
        out_specs = pl.BlockSpec((1, 8, 128), lambda i, j: (i, 0, 0))
        scratch = tuple(pltpu.VMEM((TB, 1), jnp.float32) for _ in range(5))
        dims = ("parallel", "arbitrary")   # class axis carries the online-softmax state

    partials = pl.pallas_call(
        kernel,
        out_shape=jax.ShapeDtypeStruct((num_b, 8, 128), jnp.float32),
        grid_spec=pltpu.PrefetchScalarGridSpec(
            num_scalar_prefetch=0,
            grid=grid,
            in_specs=in_specs,
            out_specs=out_specs,
            scratch_shapes=scratch,
        ),
        compiler_params=pltpu.CompilerParams(
            dimension_semantics=dims,
            vmem_limit_bytes=_VMEM_LIMIT_BYTES,
        ),
    )(outputs_student, outputs_teacher)

    # Each slab holds tile_sum/1024 replicated over (8,128): dense sum, then batchmean.
    return jnp.sum(partials) / jnp.float32(B)


# ----------------------------- reference & self-test -----------------------------------------

def _reference_loss(outputs_student, outputs_teacher, temperature=3.0):
    """Pure-JAX reference mirroring the PyTorch module's semantics."""
    s = outputs_student.astype(jnp.float32) / temperature
    t = outputs_teacher.astype(jnp.float32)
    log_p_s = jax.nn.log_softmax(s, axis=1)
    p_t = jax.nn.softmax(t, axis=1)
    log_p_t = jax.nn.log_softmax(t, axis=1)
    return jnp.sum(p_t * (log_p_t - log_p_s)) / outputs_student.shape[0]


if __name__ == "__main__":
    key = jax.random.PRNGKey(0)
    k1, k2, k3, k4, k5, k6 = jax.random.split(key, 6)

    # 1) MNIST-style logits (batch=8, classes=10), f32, single tile.
    B, C = 8, 10
    s1 = jax.random.normal(k1, (B, C), dtype=jnp.float32) * 2.0
    t1 = jax.random.normal(k2, (B, C), dtype=jnp.float32) * 2.0
    out1 = jax.block_until_ready(distillation_loss(s1, t1, temperature=3.0))
    ref1 = _reference_loss(s1, t1, temperature=3.0)
    assert jnp.allclose(out1, ref1, atol=2e-5, rtol=2e-5), (out1, ref1)

    # 2) Multi-tile ragged batch (tiles 8/8/4) with bf16 HBM-side logits.
    B2, C2 = 20, 10
    s2 = (jax.random.normal(k3, (B2, C2), dtype=jnp.float32) * 2.0).astype(jnp.bfloat16)
    t2 = (jax.random.normal(k4, (B2, C2), dtype=jnp.float32) * 2.0).astype(jnp.bfloat16)
    out2 = jax.block_until_ready(distillation_loss(s2, t2, temperature=3.0, block_batch=8))
    ref2 = _reference_loss(s2, t2, temperature=3.0)
    assert jnp.allclose(out2, ref2, atol=2e-5, rtol=2e-5), (out2, ref2)

    # 3) Class-tiled online-softmax path (ragged batch tiles + 2 class tiles).
    B3, C3 = 20, 256
    s3 = jax.random.normal(k5, (B3, C3), dtype=jnp.float32) * 2.0
    t3 = jax.random.normal(k6, (B3, C3), dtype=jnp.float32) * 2.0
    out3 = jax.block_until_ready(
        distillation_loss(s3, t3, temperature=3.0, block_batch=8, block_classes=128))
    ref3 = _reference_loss(s3, t3, temperature=3.0)
    assert jnp.allclose(out3, ref3, atol=2e-5, rtol=2e-5), (out3, ref3)

    print("KERNEL_OK")
</pallas_src>

<mosaic_0001>
module attributes {stable_mosaic.version = 11 : i64} {
  func.func @_kl_single_kernel(%arg0: i32, %arg1: memref<8x10xf32, #tpu.memory_space<vmem>>, %arg2: memref<8x10xf32, #tpu.memory_space<vmem>>, %arg3: memref<1x8x128xf32, #tpu.memory_space<vmem>>) attributes {dimension_semantics = [#tpu.dimension_semantics<parallel>], iteration_bounds = array<i64: 1>, scalar_prefetch = 0 : i64, scratch_operands = 0 : i64, tpu.core_type = #tpu.core_type<tc>, window_params = [{transform_indices = @transform_0, window_bounds = array<i64: 8, 10>}, {transform_indices = @transform_1, window_bounds = array<i64: 8, 10>}, {transform_indices = @transform_2, window_bounds = array<i64: 1, 8, 128>}]} {
    %c0 = arith.constant 0 : index
    %c0_0 = arith.constant 0 : index
    %0 = vector.load %arg1[%c0, %c0_0] : memref<8x10xf32, #tpu.memory_space<vmem>>, vector<8x10xf32>
    %cst = arith.constant 0.333333343 : f32
    %1 = vector.broadcast %cst : f32 to vector<8x10xf32>
    %2 = arith.mulf %0, %1 : vector<8x10xf32>
    %c0_1 = arith.constant 0 : index
    %c0_2 = arith.constant 0 : index
    %3 = vector.load %arg2[%c0_1, %c0_2] : memref<8x10xf32, #tpu.memory_space<vmem>>, vector<8x10xf32>
    %cst_3 = arith.constant dense<0xFF800000> : vector<8xf32>
    %4 = vector.multi_reduction <maximumf>, %2, %cst_3 [1] : vector<8x10xf32> to vector<8xf32>
    %5 = vector.shape_cast %4 : vector<8xf32> to vector<8x1xf32>
    %6 = vector.broadcast %5 : vector<8x1xf32> to vector<8x10xf32>
    %7 = arith.subf %2, %6 : vector<8x10xf32>
    %8 = math.exp %7 : vector<8x10xf32>
    %cst_4 = arith.constant dense<0.000000e+00> : vector<8xf32>
    %9 = vector.multi_reduction <add>, %8, %cst_4 [1] : vector<8x10xf32> to vector<8xf32>
    %10 = vector.shape_cast %9 : vector<8xf32> to vector<8x1xf32>
    %cst_5 = arith.constant dense<0xFF800000> : vector<8xf32>
    %11 = vector.multi_reduction <maximumf>, %3, %cst_5 [1] : vector<8x10xf32> to vector<8xf32>
    %12 = vector.shape_cast %11 : vector<8xf32> to vector<8x1xf32>
    %13 = vector.broadcast %12 : vector<8x1xf32> to vector<8x10xf32>
    %14 = arith.subf %3, %13 : vector<8x10xf32>
    %15 = math.exp %14 : vector<8x10xf32>
    %cst_6 = arith.constant dense<0.000000e+00> : vector<8xf32>
    %16 = vector.multi_reduction <add>, %15, %cst_6 [1] : vector<8x10xf32> to vector<8xf32>
    %17 = vector.shape_cast %16 : vector<8xf32> to vector<8x1xf32>
    %18 = arith.subf %14, %7 : vector<8x10xf32>
    %19 = arith.mulf %15, %18 : vector<8x10xf32>
    %cst_7 = arith.constant dense<0.000000e+00> : vector<8xf32>
    %20 = vector.multi_reduction <add>, %19, %cst_7 [1] : vector<8x10xf32> to vector<8xf32>
    %21 = vector.shape_cast %20 : vector<8xf32> to vector<8x1xf32>
    %22 = tpu.reciprocal %17 : vector<8x1xf32> -> vector<8x1xf32>
    %23 = arith.mulf %21, %22 : vector<8x1xf32>
    %24 = arith.mulf %10, %22 : vector<8x1xf32>
    %25 = math.log %24 : vector<8x1xf32>
    %26 = arith.addf %23, %25 : vector<8x1xf32>
    %27 = vector.shape_cast %26 : vector<8x1xf32> to vector<1x8x1xf32>
    %cst_8 = arith.constant dense<0.000000e+00> : vector<1xf32>
    %28 = vector.multi_reduction <add>, %27, %cst_8 [1, 2] : vector<1x8x1xf32> to vector<1xf32>
    %29 = vector.shape_cast %28 : vector<1xf32> to vector<1x1x1xf32>
    %30 = vector.extract %29[0, 0, 0] : f32 from vector<1x1x1xf32>
    %cst_9 = arith.constant 9.765625E-4 : f32
    %31 = arith.mulf %30, %cst_9 : f32
    %32 = vector.broadcast %31 : f32 to vector<1x8x128xf32>
    %c0_10 = arith.constant 0 : index
    %c0_11 = arith.constant 0 : index
    %c0_12 = arith.constant 0 : index
    %33 = vector.load %arg3[%c0_10, %c0_11, %c0_12] : memref<1x8x128xf32, #tpu.memory_space<vmem>>, vector<1x8x128xf32>
    tpu.vector_store %arg3[%c0_10, %c0_11, %c0_12], %32 {strides = array<i32>} : memref<1x8x128xf32, #tpu.memory_space<vmem>>, vector<1x8x128xf32>,
    return
  }
  func.func @transform_0(%arg0: i32) -> (i32, i32) {
    %c0_i32 = arith.constant 0 : i32
    %c0_i32_0 = arith.constant 0 : i32
    return %arg0, %c0_i32 : i32, i32
  }
  func.func @transform_1(%arg0: i32) -> (i32, i32) {
    %c0_i32 = arith.constant 0 : i32
    %c0_i32_0 = arith.constant 0 : i32
    return %arg0, %c0_i32 : i32, i32
  }
  func.func @transform_2(%arg0: i32) -> (i32, i32, i32) {
    %c0_i32 = arith.constant 0 : i32
    %c0_i32_0 = arith.constant 0 : i32
    %c0_i32_1 = arith.constant 0 : i32
    return %arg0, %c0_i32, %c0_i32_0 : i32, i32, i32
  }
}

</mosaic_0001>

<bundles_post_ra>
// kernel: tpu_custom_call.1
= control target key start
LH: loop header
LB: loop body
LE: loop exit
PB: predicated region body
PF: predicated region fallthrough
CT: control target
= control target key end

     0   :  { %7 = vsyncpa [#allocation3], 0  ;;  %s243_s0 = inlined_call_operand.hbm [shape: f32[8,10], index: 0, kind: input, shape index: {}]   ;;  %s244_s1 = inlined_call_operand.hbm [shape: f32[8,10], index: 1, kind: input, shape index: {}]   ;;  %s245_s2 = inlined_call_operand.hbm [shape: f32[1,8,128], index: 2, kind: output, shape index: {}]  }
   0x1   :  { %8 = vsyncpa [#allocation6], 0 }
   0x2   :  { %9 = vsyncpa [#allocation4], 0  ;;  %s184_s9 = smov [#allocation2]   ;;  %s185_s11 = smov [#allocation5]  }
   0x3   :  { %s16_s10 = sshll.u32 %s184_s9, 4  ;;  %s26_s12 = sshll.u32 %s185_s11, 4  ;;  %s17_s10 = int_to_ptr.vmem [resolvable:$true] %s16_s10  ;;  %s27_s12 = int_to_ptr.vmem [resolvable:$true] %s26_s12 }
   0x4   :  { %s112_s15 = scalar_lea.hbm %s243_s0, 128 }
   0x5   :  { %p113_p0 = scmp.ne.s32.totalorder %s243_s0, %s112_s15  ;;  %p116_p1 = scmp.lt.u32.totalorder %s112_s15, %s243_s0 }
   0x7   :  { %p118_p2 = pnand %p116_p1, %p113_p0 }
   0x9   :  { %121 = shalt.err (!%p118_p2)
}
   0xa   :  { %s122_s20 = scalar_lea.vmem %s17_s10, 128  ;;  %p127_p4 = scmp.lt.s32.totalorder %s17_s10, %s17_s10 }
   0xb   :  { %p123_p3 = scmp.ne.s32.totalorder %s17_s10, %s122_s20  ;;  %p128_p5 = scmp.lt.s32.totalorder %s122_s20, %s122_s20 }
   0xd   :  { %p129_p6 = por %p128_p5, %p127_p4 }
   0xf   :  { %p130_p7 = pnand %p129_p6, %p123_p3 }
  0x11   :  { %133 = shalt.err (!%p130_p7)
}
  0x12   :  { %19 = dma.hbm_to_vmem [thread:$0]  %s243_s0, 128, %s17_s10, [#allocation3]  }
  0x13   :  { %s134_s25 = scalar_lea.hbm %s244_s1, 128 }
  0x14   :  { %p135_p8 = scmp.ne.s32.totalorder %s244_s1, %s134_s25  ;;  %p138_p9 = scmp.lt.u32.totalorder %s134_s25, %s244_s1 }
  0x16   :  { %p140_p10 = pnand %p138_p9, %p135_p8 }
  0x18   :  { %143 = shalt.err (!%p140_p10)
}
  0x19   :  { %s144_s30 = scalar_lea.vmem %s27_s12, 128  ;;  %p149_p12 = scmp.lt.s32.totalorder %s27_s12, %s27_s12 }
  0x1a   :  { %p145_p11 = scmp.ne.s32.totalorder %s27_s12, %s144_s30  ;;  %p150_p13 = scmp.lt.s32.totalorder %s144_s30, %s144_s30 }
  0x1c   :  { %p151_p0 = por %p150_p13, %p149_p12 }
  0x1e   :  { %p152_p1 = pnand %p151_p0, %p145_p11 }
  0x20   :  { %155 = shalt.err (!%p152_p1)
}
  0x21   :  { %29 = dma.hbm_to_vmem [thread:$0]  %s244_s1, 128, %s27_s12, [#allocation6]  }
  0x22   :  { %178 = dma.done.wait [#allocation3], 128  }
  0x23   :  { %179 = vsyncadd [#allocation3], 4294967168 }
  0x24   :  { %180 = dma.done.wait [#allocation6], 128  }
  0x25   :  { %181 = vsyncadd [#allocation6], 4294967168  ;;  %vm39_vm0 = vcmask 80896   ;;  %v38_v0 = vld [vmem:[#allocation5] sm:$0xff]  ;;  %v36_v1 = vld [vmem:[#allocation2] sm:$0xff]  ;;  %vm69_vm1 = vcmask 7168  }
  0x26   :  { %v49_v2 = vsel %vm39_vm0, %v38_v0, -inf  ;;  %v37_v3 = vmul.f32 0.33333334, %v36_v1  ;;  %s186_s1 = smov [#allocation7]  }
  0x27   :  { %50 = vmax.xlane.f32.xlu0 %v49_v2  ;;  %s89_s4 = sshll.u32 %s186_s1, 4  ;;  %s90_s4 = int_to_ptr.vmem [resolvable:$true] %s89_s4 }
  0x28   :  { %v40_v4 = vsel %vm39_vm0, %v37_v3, -inf  ;;  %s156_s7 = scalar_lea.vmem %s90_s4, 128  ;;  %p161_p3 = scmp.lt.s32.totalorder %s90_s4, %s90_s4 }
  0x29   :  { %p157_p2 = scmp.ne.s32.totalorder %s90_s4, %s156_s7  ;;  %p162_p4 = scmp.lt.s32.totalorder %s156_s7, %s156_s7 }
  0x2b   :  { %41 = vmax.xlane.f32.xlu0 %v40_v4  ;;  %p163_p5 = por %p162_p4, %p161_p3 }
  0x2d   :  { %p164_p6 = pnand %p163_p5, %p157_p2 }
  0xb4   :  { %v51_v5 = vpop.xlane.xlu0 %50 }
  0xb5   :  { %v52_v6 = vsub.f32 %v38_v0, %v51_v5 }
  0xb7   :  { %v53_v7 = vmul.f32 1.442695, %v52_v6 }
  0xb8   :  { %v42_v8 = vpop.xlane.xlu0 %41 }
  0xb9   :  { %104 = vpow2.f32 %v53_v7  ;;  %v43_v9 = vsub.f32 %v37_v3, %v42_v8 }
  0xbb   :  { %v44_v10 = vmul.f32 1.442695, %v43_v9  ;;  %v58_v11 = vsub.f32 %v52_v6, %v43_v9 }
  0xbd   :  { %106 = vpow2.f32 %v44_v10 }
  0xc3   :  { %v105_v12 = vpop.eup %104 }
  0xc4   :  { %v55_v13 = vsel %vm39_vm0, %v105_v12, 0.0  ;;  %v59_v14 = vmul.f32 %v105_v12, %v58_v11 }
  0xc5   :  { %56 = vadd.xlane.f32.xlu1 %v55_v13 }
  0xc6   :  { %v60_v15 = vsel %vm39_vm0, %v59_v14, 0.0 }
  0xc7   :  { %v107_v16 = vpop.eup %106  ;;  %61 = vadd.xlane.f32.xlu0 %v60_v15 }
  0xc8   :  { %v46_v17 = vsel %vm39_vm0, %v107_v16, 0.0 }
  0xc9   :  { %47 = vadd.xlane.f32.xlu1 %v46_v17 }
 0x152   :  { %v57_v18 = vpop.xlane.xlu1 %56 }
 0x153   :  { %108 = vrcp.f32 %v57_v18 }
 0x154   :  { %v62_v23 = vpop.xlane.xlu0 %61 }
 0x156   :  { %v48_v19 = vpop.xlane.xlu1 %47 }
 0x15d   :  { %v109_v20 = vpop.eup %108 }
 0x15e   :  { %v65_v21 = vmul.f32 %v109_v20, %v48_v19  ;;  %v64_v24 = vmul.f32 %v109_v20, %v62_v23 }
 0x160   :  { %110 = vlog2.f32 %v65_v21 }
 0x16a   :  { %v111_v22 = vpop.eup %110 }
 0x16b   :  { %v67_v25 = vmul.f32 0.6931472, %v111_v22 }
 0x16d   :  { %v68_v26 = vadd.f32 %v67_v25, %v64_v24 }
 0x16f   :  { %v70_v27 = vsel %vm69_vm1, %v68_v26, 0.0 }
 0x170   :  { %71 = vadd.xlane.f32.xlu1 %v70_v27 }
 0x1fd   :  { %v72_v28 = vpop.xlane.xlu1 %71 }
 0x1fe   :  { %v73_v29 = vrot.slane %v72_v28, 4 }
 0x200   :  { %v74_v30 = vadd.f32 %v73_v29, %v72_v28 }
 0x202   :  { %v75_v31 = vrot.slane %v74_v30, 2 }
 0x204   :  { %v76_v32 = vadd.f32 %v75_v31, %v74_v30 }
 0x206   :  { %v77_v33 = vrot.slane %v76_v32, 1 }
 0x208   :  { %v78_v34 = vadd.f32 %v77_v33, %v76_v32 }
 0x20a   :  { %99 = vpush %v78_v34 }
 0x23b   :  { %s100_s5 = spop %99 }
 0x23c   :  { %s80_s6 = smul.f32 0.0009765625, %s100_s5 }
 0x23e   :  { %v81_v35 = vstv %s80_s6 }
 0x23f   :  { %82 = vst [vmem:[#allocation7] sm:$0xff] %v81_v35 }
 0x240   :  { %167 = shalt.err (!%p164_p6)
}
 0x241   :  { %s168_s10 = scalar_lea.hbm %s245_s2, 128 }
 0x242   :  { %p169_p7 = scmp.ne.s32.totalorder %s245_s2, %s168_s10  ;;  %p172_p8 = scmp.lt.u32.totalorder %s168_s10, %s245_s2 }
 0x244   :  { %p174_p9 = pnand %p172_p8, %p169_p7 }
 0x246   :  { %177 = shalt.err (!%p174_p9)
}
 0x247   :  { %92 = dma.vmem_to_hbm [thread:$0]  %s90_s4, 128, %s245_s2, [#allocation4]  }
 0x248   :  { %182 = dma.done.wait [#allocation4], 128  }
 0x249   :  { %183 = vsyncadd [#allocation4], 4294967168 }
 0x24a   :  { %96 = vsyncpa [#allocation3], 1 }
 0x24b   :  { %97 = vsyncpa [#allocation6], 1 }
 0x24c   :  { %98 = vsyncpa [#allocation4], 1 }

</bundles_post_ra>
